<compile_context>
chip_gen: v7x
topology: tpu7x:2x2x1
jax: 0.10.0
libtpu: 0.0.40
codegen_flags: <defaults>
</compile_context>

<pallas_src>
import jax
import jax.numpy as jnp
from jax import lax
from jax.experimental import pallas as pl
from jax.experimental.pallas import tpu as pltpu


def _quantile_decoder_kernel(x_ref, w1_ref, b1_ref, w2t_ref, b2_ref, ot_ref):
    # x_ref:   [TM, F_in]   row tile (streamed)
    # w1_ref:  [F_in, H]    resident
    # b1_ref:  [1, H]       resident
    # w2t_ref: [Q, H]       resident (linear2 weight in PyTorch [out, in] layout)
    # b2_ref:  [Q, 1]       resident
    # ot_ref:  [Q, TM]      transposed output -> lane-dense stores
    h = jnp.dot(x_ref[...], w1_ref[...], preferred_element_type=jnp.float32)
    h = h + b1_ref[...]
    # Numerically stable softplus: max(h,0) + log1p(exp(-|h|))  (== jax.nn.softplus)
    h = jnp.maximum(h, 0.0) + jnp.log1p(jnp.exp(-jnp.abs(h)))
    # Second layer in transposed form: [Q,H] x [TM,H] contracted on H -> [Q,TM]
    out_t = lax.dot_general(
        w2t_ref[...], h,
        dimension_numbers=(((1,), (1,)), ((), ())),
        preferred_element_type=jnp.float32,
    )
    out_t = out_t + b2_ref[...]
    ot_ref[...] = out_t.astype(ot_ref.dtype)


def quantile_decoder(x, w1, b1, w2, b2, *, tm=None, use_bf16=False):
    """QuantileDecoder forward.

    x:  [..., F_in]   (F_in = 2*context + covariate)
    w1: [F_in, H], b1: [H]   (H = 2*context)
    w2: [H, Q],    b2: [Q]   (Q = number_of_quantile)
    returns [..., Q] in float32.
    """
    *lead, F_in = x.shape
    H = w1.shape[1]
    Q = w2.shape[1]
    x2 = x.reshape(-1, F_in)
    N = x2.shape[0]

    # Row-tile selection: single block for small problems; otherwise 512-row
    # tiles (multiple of 128 -> lane-dense transposed output; >=2 grid steps
    # for v7x megacore once N > 512).  Pad N up instead of asserting.
    if tm is None:
        tm = -(-N // 8) * 8 if N <= 512 else 512
    tm = max(8, tm)
    n_pad = -(-N // tm) * tm
    if n_pad != N:
        x2 = jnp.pad(x2, ((0, n_pad - N), (0, 0)))

    if use_bf16:
        # Halve the dominant HBM read stream; accumulate / activate in f32.
        x2 = x2.astype(jnp.bfloat16)
        w1 = w1.astype(jnp.bfloat16)

    b1_2d = b1.reshape(1, H).astype(jnp.float32)
    w2t = jnp.transpose(w2).astype(jnp.float32)   # [Q, H]
    b2_2d = b2.reshape(Q, 1).astype(jnp.float32)

    out_t = pl.pallas_call(
        _quantile_decoder_kernel,
        out_shape=jax.ShapeDtypeStruct((Q, n_pad), jnp.float32),
        grid_spec=pltpu.PrefetchScalarGridSpec(
            num_scalar_prefetch=0,
            grid=(n_pad // tm,),
            in_specs=[
                pl.BlockSpec((tm, F_in), lambda i: (i, 0)),  # x row tile (streamed)
                pl.BlockSpec((F_in, H), lambda i: (0, 0)),   # w1   (resident)
                pl.BlockSpec((1, H), lambda i: (0, 0)),      # b1   (resident)
                pl.BlockSpec((Q, H), lambda i: (0, 0)),      # w2^T (resident)
                pl.BlockSpec((Q, 1), lambda i: (0, 0)),      # b2   (resident)
            ],
            out_specs=pl.BlockSpec((Q, tm), lambda i: (0, i)),
        ),
        compiler_params=pltpu.CompilerParams(
            dimension_semantics=("parallel",),
        ),
    )(x2, w1, b1_2d, w2t, b2_2d)

    out = out_t.T[:N]                        # [N, Q]
    return out.reshape(*lead, Q)


def _reference(x, w1, b1, w2, b2):
    h = x @ w1 + b1
    h = jax.nn.softplus(h)
    return h @ w2 + b2


if __name__ == "__main__":
    # Module hyper-params (small, consistent with __init__):
    covariate_size = 4
    context_size = 16
    number_of_quantile = 5
    input_size = 2 * context_size + covariate_size    # 36
    hidden_size = 2 * context_size                     # 32

    key = jax.random.PRNGKey(0)
    kx, kw1, kb1, kw2, kb2, kx2 = jax.random.split(key, 6)

    # Deterministic parameter init (uniform, Linear-style scale).
    lim1 = 1.0 / jnp.sqrt(input_size)
    lim2 = 1.0 / jnp.sqrt(hidden_size)
    w1 = jax.random.uniform(kw1, (input_size, hidden_size), jnp.float32, -lim1, lim1)
    b1 = jax.random.uniform(kb1, (hidden_size,), jnp.float32, -lim1, lim1)
    w2 = jax.random.uniform(kw2, (hidden_size, number_of_quantile), jnp.float32, -lim2, lim2)
    b2 = jax.random.uniform(kb2, (number_of_quantile,), jnp.float32, -lim2, lim2)

    # --- small, module-sized case: exercises the single-block path ---
    batch, seq = 2, 8
    x_small = jax.random.normal(kx, (batch, seq, input_size), jnp.float32)
    out_small = quantile_decoder(x_small, w1, b1, w2, b2)
    jax.block_until_ready(out_small)
    ref_small = _reference(x_small, w1, b1, w2, b2)
    assert out_small.shape == (batch, seq, number_of_quantile)
    assert jnp.allclose(out_small, ref_small, atol=1e-4, rtol=1e-4), "small f32 mismatch"

    # --- larger case: exercises 512-row tiles, N padding and a multi-step grid ---
    n_rows = 2000                                      # pads to 2048 -> 4 grid steps
    x_big = jax.random.normal(kx2, (n_rows, input_size), jnp.float32)
    out_big = quantile_decoder(x_big, w1, b1, w2, b2)
    jax.block_until_ready(out_big)
    ref_big = _reference(x_big, w1, b1, w2, b2)
    assert out_big.shape == (n_rows, number_of_quantile)
    assert jnp.allclose(out_big, ref_big, atol=1e-4, rtol=1e-4), "tiled f32 mismatch"

    # --- optional bf16-input path (halves the dominant HBM read stream) ---
    out_bf16 = quantile_decoder(x_big, w1, b1, w2, b2, use_bf16=True)
    jax.block_until_ready(out_bf16)
    assert jnp.allclose(out_bf16, ref_big, atol=5e-2, rtol=5e-2), "bf16 mismatch"

    print("KERNEL_OK")
</pallas_src>

<mosaic_0001>
module attributes {stable_mosaic.version = 11 : i64} {
  func.func @_quantile_decoder_kernel(%arg0: i32, %arg1: memref<16x36xf32, #tpu.memory_space<vmem>>, %arg2: memref<36x32xf32, #tpu.memory_space<vmem>>, %arg3: memref<1x32xf32, #tpu.memory_space<vmem>>, %arg4: memref<5x32xf32, #tpu.memory_space<vmem>>, %arg5: memref<5x1xf32, #tpu.memory_space<vmem>>, %arg6: memref<5x16xf32, #tpu.memory_space<vmem>>) attributes {dimension_semantics = [#tpu.dimension_semantics<parallel>], iteration_bounds = array<i64: 1>, scalar_prefetch = 0 : i64, scratch_operands = 0 : i64, tpu.core_type = #tpu.core_type<tc>, window_params = [{transform_indices = @transform_0, window_bounds = array<i64: 16, 36>}, {pipeline_mode = #tpu.pipeline_mode<synchronous>, transform_indices = @transform_1, window_bounds = array<i64: 36, 32>}, {pipeline_mode = #tpu.pipeline_mode<synchronous>, transform_indices = @transform_2, window_bounds = array<i64: 1, 32>}, {pipeline_mode = #tpu.pipeline_mode<synchronous>, transform_indices = @transform_3, window_bounds = array<i64: 5, 32>}, {pipeline_mode = #tpu.pipeline_mode<synchronous>, transform_indices = @transform_4, window_bounds = array<i64: 5, 1>}, {transform_indices = @transform_5, window_bounds = array<i64: 5, 16>}]} {
    %c0 = arith.constant 0 : index
    %c0_0 = arith.constant 0 : index
    %0 = vector.load %arg1[%c0, %c0_0] : memref<16x36xf32, #tpu.memory_space<vmem>>, vector<16x36xf32>
    %c0_1 = arith.constant 0 : index
    %c0_2 = arith.constant 0 : index
    %1 = vector.load %arg2[%c0_1, %c0_2] : memref<36x32xf32, #tpu.memory_space<vmem>>, vector<36x32xf32>
    %cst = arith.constant dense<0.000000e+00> : vector<16x32xf32>
    %2 = tpu.matmul %0, %1, %cst {dimension_numbers = #tpu.dot_dimension_numbers<[1], [0], [0], [1], [0, 0, 1, 1], [], []>} : vector<16x36xf32>, vector<36x32xf32>, vector<16x32xf32> -> vector<16x32xf32>
    %c0_3 = arith.constant 0 : index
    %c0_4 = arith.constant 0 : index
    %3 = vector.load %arg3[%c0_3, %c0_4] : memref<1x32xf32, #tpu.memory_space<vmem>>, vector<1x32xf32>
    %4 = vector.broadcast %3 : vector<1x32xf32> to vector<16x32xf32>
    %5 = arith.addf %2, %4 : vector<16x32xf32>
    %cst_5 = arith.constant 0.000000e+00 : f32
    %6 = vector.broadcast %cst_5 : f32 to vector<16x32xf32>
    %7 = arith.maximumf %5, %6 : vector<16x32xf32>
    %8 = math.absf %5 : vector<16x32xf32>
    %cst_6 = arith.constant 0.000000e+00 : f32
    %9 = vector.broadcast %cst_6 : f32 to vector<16x32xf32>
    %10 = arith.subf %9, %8 : vector<16x32xf32>
    %11 = math.exp %10 : vector<16x32xf32>
    %12 = math.log1p %11 : vector<16x32xf32>
    %13 = arith.addf %7, %12 : vector<16x32xf32>
    %c0_7 = arith.constant 0 : index
    %c0_8 = arith.constant 0 : index
    %14 = vector.load %arg4[%c0_7, %c0_8] : memref<5x32xf32, #tpu.memory_space<vmem>>, vector<5x32xf32>
    %cst_9 = arith.constant dense<0.000000e+00> : vector<5x16xf32>
    %15 = tpu.matmul %14, %13, %cst_9 {dimension_numbers = #tpu.dot_dimension_numbers<[1], [1], [0], [0], [0, 0, 1, 0], [], []>} : vector<5x32xf32>, vector<16x32xf32>, vector<5x16xf32> -> vector<5x16xf32>
    %c0_10 = arith.constant 0 : index
    %c0_11 = arith.constant 0 : index
    %16 = vector.load %arg5[%c0_10, %c0_11] : memref<5x1xf32, #tpu.memory_space<vmem>>, vector<5x1xf32>
    %17 = vector.broadcast %16 : vector<5x1xf32> to vector<5x16xf32>
    %18 = arith.addf %15, %17 : vector<5x16xf32>
    %c0_12 = arith.constant 0 : index
    %c0_13 = arith.constant 0 : index
    %19 = vector.load %arg6[%c0_12, %c0_13] : memref<5x16xf32, #tpu.memory_space<vmem>>, vector<5x16xf32>
    tpu.vector_store %arg6[%c0_12, %c0_13], %18 {strides = array<i32>} : memref<5x16xf32, #tpu.memory_space<vmem>>, vector<5x16xf32>,
    return
  }
  func.func @transform_0(%arg0: i32) -> (i32, i32) {
    %c0_i32 = arith.constant 0 : i32
    %c0_i32_0 = arith.constant 0 : i32
    return %arg0, %c0_i32 : i32, i32
  }
  func.func @transform_1(%arg0: i32) -> (i32, i32) {
    %c0_i32 = arith.constant 0 : i32
    %c0_i32_0 = arith.constant 0 : i32
    %c0_i32_1 = arith.constant 0 : i32
    return %c0_i32, %c0_i32_0 : i32, i32
  }
  func.func @transform_2(%arg0: i32) -> (i32, i32) {
    %c0_i32 = arith.constant 0 : i32
    %c0_i32_0 = arith.constant 0 : i32
    %c0_i32_1 = arith.constant 0 : i32
    return %c0_i32, %c0_i32_0 : i32, i32
  }
  func.func @transform_3(%arg0: i32) -> (i32, i32) {
    %c0_i32 = arith.constant 0 : i32
    %c0_i32_0 = arith.constant 0 : i32
    %c0_i32_1 = arith.constant 0 : i32
    return %c0_i32, %c0_i32_0 : i32, i32
  }
  func.func @transform_4(%arg0: i32) -> (i32, i32) {
    %c0_i32 = arith.constant 0 : i32
    %c0_i32_0 = arith.constant 0 : i32
    %c0_i32_1 = arith.constant 0 : i32
    return %c0_i32, %c0_i32_0 : i32, i32
  }
  func.func @transform_5(%arg0: i32) -> (i32, i32) {
    %c0_i32 = arith.constant 0 : i32
    %c0_i32_0 = arith.constant 0 : i32
    return %c0_i32, %arg0 : i32, i32
  }
}

</mosaic_0001>

<bundles_post_ra>
// kernel: tpu_custom_call.1
= control target key start
LH: loop header
LB: loop body
LE: loop exit
PB: predicated region body
PF: predicated region fallthrough
CT: control target
= control target key end

     0   :  { %vm35_vm0 = vcmask 293888   ;;  %s420_s0 = inlined_call_operand.vmem [shape: f32[16,36], index: 0, kind: input, shape index: {}]   ;;  %s421_s1 = inlined_call_operand.vmem [shape: f32[36,32], index: 1, kind: input, shape index: {}]   ;;  %s422_s2 = inlined_call_operand.vmem [shape: f32[1,32], index: 2, kind: input, shape index: {}]   ;;  %s423_s3 = inlined_call_operand.vmem [shape: f32[5,32], index: 3, kind: input, shape index: {}]   ;;  %s424_s4 = inlined_call_operand.vmem [shape: f32[5,1], index: 4, kind: input, shape index: {}]   ;;  %s425_s5 = inlined_call_operand.hbm [shape: f32[5,16], index: 5, kind: output, shape index: {}]  }
   0x1   :  { %v23_v0 = vld [vmem:[%s421_s1] sm:$0xff]  ;;  %v24_v1 = vld [vmem:[%s421_s1 + $0x8] sm:$0xff]  ;;  %v25_v2 = vld [vmem:[%s421_s1 + $0x10] sm:$0xff] }
   0x2   :  { %v291_v3 = vpack.c.bf16 %v24_v1, %v23_v0  ;;  %v26_v4 = vld [vmem:[%s421_s1 + $0x18] sm:$0xff]  ;;  %v21_v5 = vld [vmem:[%s420_s0] sm:$0xff] }
   0x3   :  { %v295_v6 = vpack.c.bf16 %v26_v4, %v25_v2  ;;  %281 = vmatprep.mubr.msk.f32.mxu0 %vm35_vm0, %v21_v5 }
   0x4   :  { %10 = vsyncpa [#allocation3], 0  ;;  %292 = vmatprep.subr.bf16.mxu0 %v291_v3  ;;  %v27_v7 = vld [vmem:[%s421_s1 + $0x20] sm:$0xf]  ;;  %vm42_vm1 = vcmask 1043456   ;;  %v22_v8 = vld [vmem:[%s420_s0 + $0x8] sm:$0xff] }
   0x5   :  { %294 = vmatpush3.bf16.msra.mxu0 %v291_v3  ;;  %v341_v9 = vmov 0.0|0.0   ;;  %vm342_vm2 = vmmov 0   ;;  %v343_v10 = vmov 0.0   ;;  %v152_v11 = vld [vmem:[%s424_s4] sm:$0x1f]  ;;  %v344_v12 = vmov 0  }
   0x6   :  { %296 = vmatprep.subr.bf16.mxu0 %v295_v6  ;;  %299 = vmatprep.subr.bf16.mxu1 %v341_v9  ;;  %v254_v13 = vld [vmem:[%s422_s2] ss:$0 sm:$0xff]  ;;  %vm158_vm5 = vcmask 261120   ;;  %s345_s4 = smov [#allocation2]   ;;  %vm238_vm7 = vcmask 126976  }
   0x7   :  { %288 = vmatprep.mubr.msk.f32.mxu1 %vm342_vm2, %v343_v10  ;;  %308 = vset.pattern.permute.xlu0 %v344_v12  ;;  %vm301_vm6 = vmpackc.low %vm158_vm5, %vm158_vm5  ;;  %v151_v47 = vld [vmem:[%s423_s3] sm:$0x1f]  ;;  %s246_s10 = sshll.u32 %s345_s4, 4  ;;  %s247_s10 = int_to_ptr.vmem [resolvable:$true] %s246_s10 }
   0x8   :  { %155 = vperm.xlu0 %308, %v152_v11   ;;  %s317_s11 = scalar_lea.vmem %s247_s10, 128  ;;  %p322_p1 = scmp.lt.s32.totalorder %s247_s10, %s247_s10 }
   0x9   :  { %298 = vmatpush3.bf16.msra.mxu0 %v295_v6  ;;  %p318_p0 = scmp.ne.s32.totalorder %s247_s10, %s317_s11  ;;  %p323_p2 = scmp.lt.s32.totalorder %s317_s11, %s317_s11 }
   0xa   :  { %279 = vmatprep.subr.msk.mxu0 %vm42_vm1, %v27_v7 }
   0xb   :  { %p324_p3 = por %p323_p2, %p322_p1 }
   0xd   :  { %280 = vmatpush3.msk.msra.mxu0 %vm42_vm1, %v27_v7  ;;  %p325_p4 = pnand %p324_p3, %p318_p0 }
   0xe   :  { %282 = vmatmul.mubr.msk.f32.vlgmr.msra.gmra.mrb[0].mxu0 %vm35_vm0, %v22_v8 }
  0x87   :  { %v156_v48 = vpop.permute.xlu0 %155 }
  0xe1   :  { %v283_v14 = vpop.f32.mrb[0].mxu0 }
  0xe2   :  { %v118_v15 = vadd.f32 %v283_v14, %v254_v13  ;;  %v112_v16 = vpop.f32.mrb[1].mxu0 }
  0xe3   :  { %v113_v17 = vadd.f32 %v254_v13, %v112_v16 }
  0xe4   :  { %v124_v18 = vand.u32 2147483647, %v118_v15  ;;  %v122_v38 = vmax.f32 %v118_v15, 0.0 }
  0xe5   :  { %v123_v19 = vand.u32 2147483647, %v113_v17  ;;  %v121_v42 = vmax.f32 %v113_v17, 0.0 }
  0xe6   :  { %v126_v20 = vsub.f32 0.0, %v124_v18 }
  0xe7   :  { %v125_v21 = vsub.f32 0.0, %v123_v19 }
  0xe8   :  { %v129_v22 = vmul.f32 1.442695, %v126_v20 }
  0xe9   :  { %v127_v23 = vmul.f32 1.442695, %v125_v21 }
  0xea   :  { %309 = vpow2.f32 %v129_v22 }
  0xeb   :  { %311 = vpow2.f32 %v127_v23 }
  0xf4   :  { %v310_v24 = vpop.eup %309 }
  0xf5   :  { %v312_v25 = vpop.eup %311  ;;  %v140_v26 = vadd.f32 1.0, %v310_v24  ;;  %v143_v28 = vmul.f32 -0.5, %v310_v24  ;;  %v146_v31 = vand.u32 2147483647, %v310_v24 }
  0xf6   :  { %v131_v27 = vadd.f32 1.0, %v312_v25  ;;  %v134_v29 = vmul.f32 -0.5, %v312_v25  ;;  %v137_v33 = vand.u32 2147483647, %v312_v25 }
  0xf7   :  { %313 = vlog2.f32 %v140_v26  ;;  %v144_v30 = vadd.f32 1.0, %v143_v28  ;;  %vm147_vm3 = vcmp.lt.f32.partialorder %v146_v31, 0.0004427343 }
  0xf8   :  { %315 = vlog2.f32 %v131_v27  ;;  %v135_v32 = vadd.f32 1.0, %v134_v29  ;;  %vm138_vm4 = vcmp.lt.f32.partialorder %v137_v33, 0.0004427343 }
  0xf9   :  { %v145_v37 = vmul.f32 %v310_v24, %v144_v30 }
  0xfa   :  { %v136_v40 = vmul.f32 %v312_v25, %v135_v32 }
 0x101   :  { %v314_v34 = vpop.eup %313 }
 0x102   :  { %v316_v35 = vpop.eup %315  ;;  %v142_v36 = vmul.f32 0.6931472, %v314_v34 }
 0x103   :  { %v133_v39 = vmul.f32 0.6931472, %v316_v35 }
 0x104   :  { %v148_v41 = vsel %vm147_vm3, %v145_v37, %v142_v36 }
 0x105   :  { %v150_v43 = vadd.f32 %v148_v41, %v122_v38  ;;  %v139_v44 = vsel %vm138_vm4, %v136_v40, %v133_v39 }
 0x106   :  { %v149_v45 = vadd.f32 %v139_v44, %v121_v42 }
 0x108   :  { %v300_v46 = vpack.c.bf16 %v150_v43, %v149_v45 }
 0x10a   :  { %302 = vmatpush3.bf16.xpose.msk.msra.mxu1 %vm301_vm6, %v300_v46 }
 0x111   :  { %289 = vmatmul.mubr.msk.f32.vlgmr.msra.gmra.mrb[0].mxu1 %vm158_vm5, %v151_v47 }
 0x1e4   :  { %v234_v49 = vpop.f32.mrb[0].mxu1 }
 0x1e5   :  { %v235_v50 = vadd.f32 %v234_v49, %v156_v48  ;;  %v290_v51 = vpop.f32.mrb[1].mxu1 }
 0x1e7   :  { %239 = vst.msk [vmem:[#allocation2] sm:$0x1f] %vm238_vm7, %v235_v50 }
 0x1e8   :  { %328 = shalt.err (!%p325_p4)
}
 0x1e9   :  { %s329_s3 = scalar_lea.hbm %s425_s5, 128 }
 0x1ea   :  { %p330_p5 = scmp.ne.s32.totalorder %s425_s5, %s329_s3  ;;  %p333_p6 = scmp.lt.u32.totalorder %s329_s3, %s425_s5 }
 0x1ec   :  { %p335_p7 = pnand %p333_p6, %p330_p5 }
 0x1ee   :  { %338 = shalt.err (!%p335_p7)
}
 0x1ef   :  { %249 = dma.vmem_to_hbm [thread:$0]  %s247_s10, 128, %s425_s5, [#allocation3]  }
 0x1f0   :  { %339 = dma.done.wait [#allocation3], 128  }
 0x1f1   :  { %340 = vsyncadd [#allocation3], 4294967168 }
 0x1f2   :  { %253 = vsyncpa [#allocation3], 1 }

</bundles_post_ra>
